<compile_context>
chip_gen: v7x
topology: tpu7x:2x2x1
jax: 0.10.0
libtpu: 0.0.40
codegen_flags: <defaults>
</compile_context>

<pallas_src>
import functools
import math

import numpy as np
import jax
import jax.numpy as jnp
from jax.experimental import pallas as pl
from jax.experimental.pallas import tpu as pltpu


# ----------------------------------------------------------------------------
# Pallas kernel: 5-point Darcy stencil on a (Hp, lane_tile) block whose lanes
# are b*W + j (batch folded into lanes), rows are the grid row i.
# ----------------------------------------------------------------------------
def _darcy_stencil(u, a, *, H, W, dx, dy, f):
    Hb, Lb = u.shape
    colf = jax.lax.broadcasted_iota(jnp.int32, (Hb, Lb), 1).astype(jnp.float32)
    rowf = jax.lax.broadcasted_iota(jnp.int32, (Hb, Lb), 0).astype(jnp.float32)
    # j = column index inside its own batch image (= global_col % W).  Blocks
    # always start on a multiple of W, so the local iota has the right phase.
    j = colf - jnp.floor((colf + 0.5) / W) * W
    has_l = j > 0.5              # left  x-neighbour exists (edge_attr[:,0] > 0)
    has_r = j < (W - 1.5)        # right x-neighbour exists (edge_attr[:,0] < 0)
    has_u = rowf > 0.5           # upper y-neighbour exists (edge_attr[:,1] > 0)
    has_d = rowf < (H - 1.5)     # lower y-neighbour exists (edge_attr[:,1] < 0)

    # Neighbour shifts via XLU rotations.  Shifts must be non-negative, so the
    # "+1 neighbour" uses a circular shift of (size - 1); every wrap-around
    # value (batch boundary, padding, grid edge) is masked off by has_*.
    u_l = pltpu.roll(u, shift=1, axis=1)        # u[i, j-1]
    u_r = pltpu.roll(u, shift=Lb - 1, axis=1)   # u[i, j+1]
    u_u = pltpu.roll(u, shift=1, axis=0)        # u[i-1, j]
    u_d = pltpu.roll(u, shift=Hb - 1, axis=0)   # u[i+1, j]
    a_l = pltpu.roll(a, shift=1, axis=1)
    a_r = pltpu.roll(a, shift=Lb - 1, axis=1)
    a_u = pltpu.roll(a, shift=1, axis=0)
    a_d = pltpu.roll(a, shift=Hb - 1, axis=0)

    zero = jnp.zeros_like(u)
    # Folded algebra: the boundary a-value (a/2) never matters because the
    # derivative term is 0 there, so one select per direction and one constant
    # multiply (0.5/dx^2, 0.5/dy^2) replace the 8 selects + repeated divisions.
    t_xp = jnp.where(has_l, (a_l + a) * (u - u_l), zero)
    t_xm = jnp.where(has_r, (a_r + a) * (u_r - u), zero)
    t_yp = jnp.where(has_u, (a_u + a) * (u - u_u), zero)
    t_ym = jnp.where(has_d, (a_d + a) * (u_d - u), zero)

    cx = 0.5 / (dx * dx)
    cy = 0.5 / (dy * dy)
    return cx * (t_xp - t_xm) + cy * (t_yp - t_ym) - f


def _darcy_kernel(u_ref, a_ref, out_ref, *, H, W, dx, dy, f):
    out_ref[...] = _darcy_stencil(u_ref[...], a_ref[...], H=H, W=W, dx=dx, dy=dy, f=f)


def _darcy_kernel_masked(u_ref, a_ref, m_ref, out_ref, *, H, W, dx, dy, f):
    loss = _darcy_stencil(u_ref[...], a_ref[...], H=H, W=W, dx=dx, dy=dy, f=f)
    out_ref[...] = loss * (1.0 - m_ref[...])


def _round_up(x, m):
    return ((x + m - 1) // m) * m


def darcy_loss_pallas(u_grid, a_grid, mask_grid=None, *, dx=0.1, dy=0.1, f=1.0,
                      vmem_block_budget_bytes=8 << 20):
    """u_grid, a_grid[, mask_grid]: (B, H, W) float grids.  Returns (B, H, W) Darcy residual."""
    B, H, W = u_grid.shape
    L = B * W

    # Fold batch into the lane axis: (B, H, W) -> (H, B*W).
    def fold(x):
        return jnp.transpose(x.astype(jnp.float32), (1, 0, 2)).reshape(H, L)

    operands = [fold(u_grid), fold(a_grid)]
    if mask_grid is not None:
        operands.append(fold(mask_grid))

    # Pad to native tiles: rows to a multiple of 8; lanes to a multiple of
    # `unit` = lcm(W, 128) so every lane tile is 128-aligned AND starts on a
    # batch-image boundary (rolls never couple different batch images, and the
    # wrap values that do appear are killed by the has_* masks).
    Hp = _round_up(H, 8)
    unit = (128 * W) // math.gcd(128, W)
    n_stream = len(operands) + 1                        # inputs + output
    bytes_per_unit = 2 * n_stream * Hp * unit * 4       # double-buffered f32
    max_units = max(1, int(vmem_block_budget_bytes // bytes_per_unit))
    lane_tile = unit * max_units
    Lp = _round_up(L, unit)
    if lane_tile >= Lp:
        lane_tile = Lp                                  # whole batch in one block
    else:
        Lp = _round_up(L, lane_tile)
    num_steps = Lp // lane_tile

    padded = [jnp.pad(x, ((0, Hp - H), (0, Lp - L))) for x in operands]

    kernel_fn = _darcy_kernel if mask_grid is None else _darcy_kernel_masked
    kernel = functools.partial(kernel_fn, H=H, W=W, dx=float(dx), dy=float(dy), f=float(f))
    spec = pl.BlockSpec((Hp, lane_tile), lambda g: (0, g))

    out2 = pl.pallas_call(
        kernel,
        out_shape=jax.ShapeDtypeStruct((Hp, Lp), jnp.float32),
        grid=(num_steps,),
        in_specs=[spec] * len(padded),
        out_specs=spec,
        compiler_params=pltpu.CompilerParams(dimension_semantics=("parallel",)),
    )(*padded)

    return out2[:H, :L].reshape(H, B, W).transpose(1, 0, 2)


# ----------------------------------------------------------------------------
# Pure-JAX graph reference (exact torch_geometric / torch_scatter semantics).
# ----------------------------------------------------------------------------
def _scatter_mean_masked(vals, mask, dst, n):
    w = mask.astype(vals.dtype)
    s = jax.ops.segment_sum(vals * w, dst, num_segments=n)
    c = jax.ops.segment_sum(w, dst, num_segments=n)
    return jnp.where(c > 0, s / jnp.maximum(c, 1.0), 0.0)


def darcy_loss_graph_reference(u, a, edge_index, edge_attr, dx, dy, f):
    n = u.shape[0]
    src, dst = edge_index[0], edge_index[1]

    def filter_edge_average(sign_mask):
        mean = _scatter_mean_masked(a[src], sign_mask, dst, n)
        return (mean + a) / 2.0

    def local_derivative(sign_mask, k):
        denom = jnp.where(sign_mask, edge_attr[:, k], 1.0)
        d = jnp.where(sign_mask, (u[dst] - u[src]) / denom, 0.0)
        return _scatter_mean_masked(d, sign_mask, dst, n)

    mx_p = edge_attr[:, 0] > 0
    mx_m = edge_attr[:, 0] < 0
    my_p = edge_attr[:, 1] > 0
    my_m = edge_attr[:, 1] < 0

    a_xp = filter_edge_average(mx_p)
    a_xm = filter_edge_average(mx_m)
    a_yp = filter_edge_average(my_p)
    a_ym = filter_edge_average(my_m)
    u_xp = local_derivative(mx_p, 0)
    u_xm = local_derivative(mx_m, 0)
    u_yp = local_derivative(my_p, 1)
    u_ym = local_derivative(my_m, 1)

    loss = (a_xp * u_xp - a_xm * u_xm) / dx + (a_yp * u_yp - a_ym * u_ym) / dy - f
    return loss[:, None]   # (nb_node, 1), matches PyTorch output shape


def build_grid_graph(H, W, dx, dy):
    """4-neighbour directed grid graph, edge_attr = pos[dest] - pos[src]."""
    ids = np.arange(H * W, dtype=np.int32).reshape(H, W)
    srcs, dsts, attrs = [], [], []
    # x direction (columns): (i,j) -> (i,j+1) and back
    s = ids[:, :-1].ravel(); d = ids[:, 1:].ravel()
    srcs += [s, d]; dsts += [d, s]
    attrs += [np.tile([dx, 0.0], (s.size, 1)), np.tile([-dx, 0.0], (s.size, 1))]
    # y direction (rows): (i,j) -> (i+1,j) and back
    s = ids[:-1, :].ravel(); d = ids[1:, :].ravel()
    srcs += [s, d]; dsts += [d, s]
    attrs += [np.tile([0.0, dy], (s.size, 1)), np.tile([0.0, -dy], (s.size, 1))]
    edge_index = jnp.asarray(np.stack([np.concatenate(srcs), np.concatenate(dsts)]),
                             dtype=jnp.int32)
    edge_attr = jnp.asarray(np.concatenate(attrs), dtype=jnp.float32)
    return edge_index, edge_attr


if __name__ == "__main__":
    B, H, W = 2, 16, 16
    N = H * W
    dx = dy = 0.1
    f = 1.0

    key = jax.random.PRNGKey(0)
    k1, k2, k3 = jax.random.split(key, 3)
    # out.x : FNO output node features (N, 2); channel 0 (index_derivative_node) is u
    out_x = jax.random.normal(k1, (B, N, 2), dtype=jnp.float32)
    # a_x.x : PDE coefficient node features (N, 3); forward slices channel 0
    a_x_x = jax.random.uniform(k2, (B, N, 3), dtype=jnp.float32, minval=0.5, maxval=1.5)
    # mask path of the PyTorch forward: mask has the same shape as loss (N, 1)
    mask_nodes = (jax.random.uniform(k3, (B, N, 1)) < 0.25).astype(jnp.float32)

    edge_index, edge_attr = build_grid_graph(H, W, dx, dy)

    u_grid = out_x[:, :, 0].reshape(B, H, W)
    a_grid = a_x_x[:, :, 0].reshape(B, H, W)
    mask_grid = mask_nodes[:, :, 0].reshape(B, H, W)

    # mask=None path (specialized 3-operand kernel)
    loss_grid = jax.block_until_ready(
        darcy_loss_pallas(u_grid, a_grid, None, dx=dx, dy=dy, f=f))
    loss_nodes = loss_grid.reshape(B, N, 1)

    # mask path
    loss_grid_m = jax.block_until_ready(
        darcy_loss_pallas(u_grid, a_grid, mask_grid, dx=dx, dy=dy, f=f))
    loss_nodes_m = loss_grid_m.reshape(B, N, 1)

    # Verify against the graph-based reference for each graph in the batch.
    for b in range(B):
        ref = darcy_loss_graph_reference(
            out_x[b, :, 0], a_x_x[b, :, 0], edge_index, edge_attr, dx, dy, f)
        np.testing.assert_allclose(np.asarray(loss_nodes[b]), np.asarray(ref),
                                   rtol=2e-4, atol=2e-3)
        ref_m = np.asarray(ref) * (1.0 - np.asarray(mask_nodes[b]))
        np.testing.assert_allclose(np.asarray(loss_nodes_m[b]), ref_m,
                                   rtol=2e-4, atol=2e-3)

    print("KERNEL_OK")
</pallas_src>

<mosaic_0001>
module attributes {stable_mosaic.version = 11 : i64} {
  func.func @_darcy_kernel(%arg0: i32, %arg1: memref<16x128xf32, #tpu.memory_space<vmem>>, %arg2: memref<16x128xf32, #tpu.memory_space<vmem>>, %arg3: memref<16x128xf32, #tpu.memory_space<vmem>>) attributes {dimension_semantics = [#tpu.dimension_semantics<parallel>], iteration_bounds = array<i64: 1>, scalar_prefetch = 0 : i64, scratch_operands = 0 : i64, tpu.core_type = #tpu.core_type<tc>, window_params = [{transform_indices = @transform_0, window_bounds = array<i64: 16, 128>}, {transform_indices = @transform_1, window_bounds = array<i64: 16, 128>}, {transform_indices = @transform_2, window_bounds = array<i64: 16, 128>}]} {
    %c0 = arith.constant 0 : index
    %c0_0 = arith.constant 0 : index
    %0 = vector.load %arg1[%c0, %c0_0] : memref<16x128xf32, #tpu.memory_space<vmem>>, vector<16x128xf32>
    %c0_1 = arith.constant 0 : index
    %c0_2 = arith.constant 0 : index
    %1 = vector.load %arg2[%c0_1, %c0_2] : memref<16x128xf32, #tpu.memory_space<vmem>>, vector<16x128xf32>
    %2 = tpu.iota {dimensions = array<i32: 1>} : vector<16x128xi32>
    %3 = arith.sitofp %2 : vector<16x128xi32> to vector<16x128xf32>
    %4 = tpu.iota {dimensions = array<i32: 0>} : vector<16x128xi32>
    %5 = arith.sitofp %4 : vector<16x128xi32> to vector<16x128xf32>
    %cst = arith.constant 5.000000e-01 : f32
    %6 = vector.broadcast %cst : f32 to vector<16x128xf32>
    %7 = arith.addf %3, %6 : vector<16x128xf32>
    %cst_3 = arith.constant 1.600000e+01 : f32
    %8 = vector.broadcast %cst_3 : f32 to vector<16x128xf32>
    %9 = arith.divf %7, %8 : vector<16x128xf32>
    %10 = math.floor %9 : vector<16x128xf32>
    %cst_4 = arith.constant 1.600000e+01 : f32
    %11 = vector.broadcast %cst_4 : f32 to vector<16x128xf32>
    %12 = arith.mulf %10, %11 : vector<16x128xf32>
    %13 = arith.subf %3, %12 : vector<16x128xf32>
    %cst_5 = arith.constant 5.000000e-01 : f32
    %14 = vector.broadcast %cst_5 : f32 to vector<16x128xf32>
    %15 = arith.cmpf ogt, %13, %14 : vector<16x128xf32>
    %cst_6 = arith.constant 1.450000e+01 : f32
    %16 = vector.broadcast %cst_6 : f32 to vector<16x128xf32>
    %17 = arith.cmpf olt, %13, %16 : vector<16x128xf32>
    %cst_7 = arith.constant 5.000000e-01 : f32
    %18 = vector.broadcast %cst_7 : f32 to vector<16x128xf32>
    %19 = arith.cmpf ogt, %5, %18 : vector<16x128xf32>
    %cst_8 = arith.constant 1.450000e+01 : f32
    %20 = vector.broadcast %cst_8 : f32 to vector<16x128xf32>
    %21 = arith.cmpf olt, %5, %20 : vector<16x128xf32>
    %c1_i32 = arith.constant 1 : i32
    %22 = tpu.dynamic_rotate %0 by %c1_i32 dim 1 : vector<16x128xf32>, i32 -> vector<16x128xf32>
    %c127_i32 = arith.constant 127 : i32
    %23 = tpu.dynamic_rotate %0 by %c127_i32 dim 1 : vector<16x128xf32>, i32 -> vector<16x128xf32>
    %c1_i32_9 = arith.constant 1 : i32
    %24 = tpu.dynamic_rotate %0 by %c1_i32_9 dim 0 : vector<16x128xf32>, i32 -> vector<16x128xf32>
    %c15_i32 = arith.constant 15 : i32
    %25 = tpu.dynamic_rotate %0 by %c15_i32 dim 0 : vector<16x128xf32>, i32 -> vector<16x128xf32>
    %c1_i32_10 = arith.constant 1 : i32
    %26 = tpu.dynamic_rotate %1 by %c1_i32_10 dim 1 : vector<16x128xf32>, i32 -> vector<16x128xf32>
    %c127_i32_11 = arith.constant 127 : i32
    %27 = tpu.dynamic_rotate %1 by %c127_i32_11 dim 1 : vector<16x128xf32>, i32 -> vector<16x128xf32>
    %c1_i32_12 = arith.constant 1 : i32
    %28 = tpu.dynamic_rotate %1 by %c1_i32_12 dim 0 : vector<16x128xf32>, i32 -> vector<16x128xf32>
    %c15_i32_13 = arith.constant 15 : i32
    %29 = tpu.dynamic_rotate %1 by %c15_i32_13 dim 0 : vector<16x128xf32>, i32 -> vector<16x128xf32>
    %cst_14 = arith.constant 0.000000e+00 : f32
    %30 = vector.broadcast %cst_14 : f32 to vector<16x128xf32>
    %31 = arith.addf %26, %1 : vector<16x128xf32>
    %32 = arith.subf %0, %22 : vector<16x128xf32>
    %33 = arith.mulf %31, %32 : vector<16x128xf32>
    %34 = arith.select %15, %33, %30 : vector<16x128xi1>, vector<16x128xf32>
    %35 = arith.addf %27, %1 : vector<16x128xf32>
    %36 = arith.subf %23, %0 : vector<16x128xf32>
    %37 = arith.mulf %35, %36 : vector<16x128xf32>
    %38 = arith.select %17, %37, %30 : vector<16x128xi1>, vector<16x128xf32>
    %39 = arith.addf %28, %1 : vector<16x128xf32>
    %40 = arith.subf %0, %24 : vector<16x128xf32>
    %41 = arith.mulf %39, %40 : vector<16x128xf32>
    %42 = arith.select %19, %41, %30 : vector<16x128xi1>, vector<16x128xf32>
    %43 = arith.addf %29, %1 : vector<16x128xf32>
    %44 = arith.subf %25, %0 : vector<16x128xf32>
    %45 = arith.mulf %43, %44 : vector<16x128xf32>
    %46 = arith.select %21, %45, %30 : vector<16x128xi1>, vector<16x128xf32>
    %47 = arith.subf %34, %38 : vector<16x128xf32>
    %cst_15 = arith.constant 5.000000e+01 : f32
    %48 = vector.broadcast %cst_15 : f32 to vector<16x128xf32>
    %49 = arith.mulf %48, %47 : vector<16x128xf32>
    %50 = arith.subf %42, %46 : vector<16x128xf32>
    %cst_16 = arith.constant 5.000000e+01 : f32
    %51 = vector.broadcast %cst_16 : f32 to vector<16x128xf32>
    %52 = arith.mulf %51, %50 : vector<16x128xf32>
    %53 = arith.addf %49, %52 : vector<16x128xf32>
    %cst_17 = arith.constant 1.000000e+00 : f32
    %54 = vector.broadcast %cst_17 : f32 to vector<16x128xf32>
    %55 = arith.subf %53, %54 : vector<16x128xf32>
    %c0_18 = arith.constant 0 : index
    %c0_19 = arith.constant 0 : index
    %56 = vector.load %arg3[%c0_18, %c0_19] : memref<16x128xf32, #tpu.memory_space<vmem>>, vector<16x128xf32>
    tpu.vector_store %arg3[%c0_18, %c0_19], %55 {strides = array<i32>} : memref<16x128xf32, #tpu.memory_space<vmem>>, vector<16x128xf32>,
    return
  }
  func.func @transform_0(%arg0: i32) -> (i32, i32) {
    %c0_i32 = arith.constant 0 : i32
    %c0_i32_0 = arith.constant 0 : i32
    return %c0_i32, %arg0 : i32, i32
  }
  func.func @transform_1(%arg0: i32) -> (i32, i32) {
    %c0_i32 = arith.constant 0 : i32
    %c0_i32_0 = arith.constant 0 : i32
    return %c0_i32, %arg0 : i32, i32
  }
  func.func @transform_2(%arg0: i32) -> (i32, i32) {
    %c0_i32 = arith.constant 0 : i32
    %c0_i32_0 = arith.constant 0 : i32
    return %c0_i32, %arg0 : i32, i32
  }
}

</mosaic_0001>

<bundles_post_ra>
// kernel: tpu_custom_call.1
= control target key start
LH: loop header
LB: loop body
LE: loop exit
PB: predicated region body
PF: predicated region fallthrough
CT: control target
= control target key end

     0   :  { %7 = vsyncpa [#allocation3], 0  ;;  %s374_s0 = inlined_call_operand.hbm [shape: f32[16,128], index: 0, kind: input, shape index: {}]   ;;  %s375_s1 = inlined_call_operand.hbm [shape: f32[16,128], index: 1, kind: input, shape index: {}]   ;;  %s376_s2 = inlined_call_operand.hbm [shape: f32[16,128], index: 2, kind: output, shape index: {}]  }
   0x1   :  { %8 = vsyncpa [#allocation6], 0 }
   0x2   :  { %9 = vsyncpa [#allocation4], 0  ;;  %s243_s9 = smov [#allocation2]   ;;  %s171_s13 = scalar_lea.hbm %s374_s0, 256 }
   0x3   :  { %s15_s10 = sshll.u32 %s243_s9, 4  ;;  %p172_p0 = scmp.ne.s32.totalorder %s374_s0, %s171_s13  ;;  %s16_s10 = int_to_ptr.vmem [resolvable:$true] %s15_s10 }
   0x4   :  { %p175_p1 = scmp.lt.u32.totalorder %s171_s13, %s374_s0 }
   0x6   :  { %p177_p2 = pnand %p175_p1, %p172_p0 }
   0x8   :  { %180 = shalt.err (!%p177_p2)
}
   0x9   :  { %s181_s18 = scalar_lea.vmem %s16_s10, 256  ;;  %p186_p4 = scmp.lt.s32.totalorder %s16_s10, %s16_s10 }
   0xa   :  { %p182_p3 = scmp.ne.s32.totalorder %s16_s10, %s181_s18  ;;  %p187_p5 = scmp.lt.s32.totalorder %s181_s18, %s181_s18 }
   0xc   :  { %p188_p6 = por %p187_p5, %p186_p4 }
   0xe   :  { %p189_p7 = pnand %p188_p6, %p182_p3 }
  0x10   :  { %192 = shalt.err (!%p189_p7)
}
  0x11   :  { %s244_s19 = smov 128   ;;  %s245_s20 = smov 8  }
  0x12   :  { %21 = dma.hbm_to_vmem [thread:$0]  %s374_s0, 256, %s16_s10, [#allocation3], %s244_s19, %s244_s19, %s245_s20  }
  0x13   :  { %s246_s23 = smov [#allocation5]   ;;  %s193_s27 = scalar_lea.hbm %s375_s1, 256 }
  0x14   :  { %s27_s24 = sshll.u32 %s246_s23, 4  ;;  %p194_p8 = scmp.ne.s32.totalorder %s375_s1, %s193_s27  ;;  %s28_s24 = int_to_ptr.vmem [resolvable:$true] %s27_s24 }
  0x15   :  { %p197_p9 = scmp.lt.u32.totalorder %s193_s27, %s375_s1 }
  0x17   :  { %p199_p10 = pnand %p197_p9, %p194_p8 }
  0x19   :  { %202 = shalt.err (!%p199_p10)
}
  0x1a   :  { %s203_s4 = scalar_lea.vmem %s28_s24, 256  ;;  %p208_p12 = scmp.lt.s32.totalorder %s28_s24, %s28_s24 }
  0x1b   :  { %p204_p11 = scmp.ne.s32.totalorder %s28_s24, %s203_s4  ;;  %p209_p13 = scmp.lt.s32.totalorder %s203_s4, %s203_s4 }
  0x1d   :  { %p210_p0 = por %p209_p13, %p208_p12 }
  0x1f   :  { %p211_p1 = pnand %p210_p0, %p204_p11 }
  0x21   :  { %214 = shalt.err (!%p211_p1)
}
  0x22   :  { %33 = dma.hbm_to_vmem [thread:$0]  %s375_s1, 256, %s28_s24, [#allocation6], %s244_s19, %s244_s19, %s245_s20  }
  0x23   :  { %237 = dma.done.wait [#allocation3], 256  }
  0x24   :  { %238 = vsyncadd [#allocation3], 4294967040 }
  0x25   :  { %239 = dma.done.wait [#allocation6], 256  }
  0x26   :  { %240 = vsyncadd [#allocation6], 4294967040  ;;  %v295_v0 = vld [vmem:[#allocation2] sm:$0xff]  ;;  %s247_s6 = smov 127   ;;  %s248_s7 = smov 1   ;;  %v299_v1 = vld [vmem:[#allocation2 + $0x8] sm:$0xff]  ;;  %v44_v4 = vlaneseq }
  0x27   :  { %68 = vrot.lane.b32.xlu1 %v295_v0, %s247_s6  ;;  %64 = vrot.lane.b32.xlu0 %v295_v0, %s248_s7  ;;  %v303_v2 = vld [vmem:[#allocation5 + $0x8] sm:$0xff]  ;;  %v305_v3 = vld [vmem:[#allocation5] sm:$0xff]  ;;  %v72_v9 = vrot.slane %v295_v0, 7  ;;  %v73_v10 = vrot.slane %v299_v1, 7  ;;  %v77_v13 = vrot.slane %v295_v0, 1  ;;  %v78_v14 = vrot.slane %v299_v1, 1 }
  0x28   :  { %v45_v5 = vand.u32 127, %v44_v4  ;;  %v48_v7 = vshrl.u32 %v44_v4, 7  ;;  %v90_v11 = vrot.slane %v305_v3, 7  ;;  %v91_v12 = vrot.slane %v303_v2, 7  ;;  %s249_s1 = smov [#allocation7]  }
  0x29   :  { %v94_v15 = vrot.slane %v305_v3, 1  ;;  %v95_v16 = vrot.slane %v303_v2, 1  ;;  %s149_s8 = sshll.u32 %s249_s1, 4  ;;  %s150_s8 = int_to_ptr.vmem [resolvable:$true] %s149_s8 }
  0x2a   :  { %v46_v6 = vcvt.s32.f32 %v45_v5  ;;  %vm74_vm0 = vcmp.lt.s32.totalorder %v48_v7, 1  ;;  %v49_v18 = vadd.s32 8, %v48_v7  ;;  %vm79_vm1 = vcmp.lt.s32.totalorder %v48_v7, 7  ;;  %s215_s9 = scalar_lea.vmem %s150_s8, 256  ;;  %p220_p3 = scmp.lt.s32.totalorder %s150_s8, %s150_s8 }
  0x2b   :  { %70 = vrot.lane.b32.xlu1 %v299_v1, %s247_s6  ;;  %66 = vrot.lane.b32.xlu0 %v299_v1, %s248_s7  ;;  %v75_v19 = vsel %vm74_vm0, %v72_v9, %v73_v10  ;;  %v76_v20 = vsel %vm74_vm0, %v73_v10, %v72_v9  ;;  %v92_v21 = vsel %vm74_vm0, %v90_v11, %v91_v12  ;;  %v50_v30 = vcvt.s32.f32 %v48_v7  ;;  %p216_p2 = scmp.ne.s32.totalorder %s150_s8, %s215_s9  ;;  %p221_p4 = scmp.lt.s32.totalorder %s215_s9, %s215_s9 }
  0x2c   :  { %v52_v8 = vadd.f32 0.5, %v46_v6  ;;  %v93_v22 = vsel %vm74_vm0, %v91_v12, %v90_v11  ;;  %v80_v25 = vsel %vm79_vm1, %v77_v13, %v78_v14  ;;  %v81_v26 = vsel %vm79_vm1, %v78_v14, %v77_v13 }
  0x2d   :  { %v96_v27 = vsel %vm79_vm1, %v94_v15, %v95_v16  ;;  %v97_v28 = vsel %vm79_vm1, %v95_v16, %v94_v15  ;;  %v51_v31 = vcvt.s32.f32 %v49_v18  ;;  %v114_v32 = vadd.f32 %v93_v22, %v305_v3  ;;  %p222_p5 = por %p221_p4, %p220_p3 }
  0x2e   :  { %v54_v17 = vmul.f32 0.0625, %v52_v8  ;;  %v115_v33 = vadd.f32 %v92_v21, %v303_v2  ;;  %v116_v34 = vsub.f32 %v295_v0, %v76_v20  ;;  %v117_v35 = vsub.f32 %v299_v1, %v75_v19 }
  0x2f   :  { %84 = vrot.lane.b32.xlu1 %v303_v2, %s248_s7  ;;  %82 = vrot.lane.b32.xlu0 %v305_v3, %s248_s7  ;;  %v122_v36 = vadd.f32 %v96_v27, %v305_v3  ;;  %v123_v37 = vadd.f32 %v97_v28, %v303_v2  ;;  %v124_v38 = vsub.f32 %v80_v25, %v295_v0  ;;  %vm327_vm2 = vcmp.gt.f32.partialorder %v50_v30, 0.5  ;;  %p223_p6 = pnand %p222_p5, %p216_p2 }
  0x30   :  { %v55_v29 = vfloor.f32 %v54_v17  ;;  %v125_v39 = vsub.f32 %v81_v26, %v299_v1  ;;  %v118_v43 = vmul.f32 %v116_v34, %v114_v32  ;;  %v119_v44 = vmul.f32 %v117_v35, %v115_v33 }
  0x31   :  { %vm331_vm3 = vcmp.gt.f32.partialorder %v51_v31, 0.5  ;;  %v126_v47 = vmul.f32 %v124_v38, %v122_v36  ;;  %vm335_vm4 = vcmp.lt.f32.partialorder %v50_v30, 14.5  ;;  %vm339_vm5 = vcmp.lt.f32.partialorder %v51_v31, 14.5 }
  0x32   :  { %v56_v42 = vmul.f32 16.0, %v55_v29  ;;  %v127_v48 = vmul.f32 %v125_v39, %v123_v37  ;;  %v120_v56 = vsel %vm327_vm2, %v118_v43, 0.0  ;;  %v121_v57 = vsel %vm331_vm3, %v119_v44, 0.0 }
  0x33   :  { %88 = vrot.lane.b32.xlu1 %v303_v2, %s247_s6  ;;  %86 = vrot.lane.b32.xlu0 %v305_v3, %s247_s6  ;;  %v128_v60 = vsel %vm335_vm4, %v126_v47, 0.0 }
  0x34   :  { %v57_v55 = vsub.f32 %v46_v6, %v56_v42  ;;  %v129_v61 = vsel %vm339_vm5, %v127_v48, 0.0  ;;  %v134_v10 = vsub.f32 %v120_v56, %v128_v60 }
  0x35   :  { %v135_v11 = vsub.f32 %v121_v57, %v129_v61 }
  0x36   :  { %vm58_vm6 = vcmp.gt.f32.partialorder %v57_v55, 0.5  ;;  %vm59_vm7 = vcmp.lt.f32.partialorder %v57_v55, 14.5  ;;  %v136_v18 = vmul.f32 50.0, %v134_v10 }
  0x37   :  { %v137_v19 = vmul.f32 50.0, %v135_v11 }
  0x99   :  { %v69_v23 = vpop.permute.xlu1 %68  ;;  %v65_v24 = vpop.permute.xlu0 %64 }
  0x9a   :  { %v100_v58 = vsub.f32 %v295_v0, %v65_v24  ;;  %v108_v62 = vsub.f32 %v69_v23, %v295_v0 }
  0x9d   :  { %v71_v40 = vpop.permute.xlu1 %70  ;;  %v67_v41 = vpop.permute.xlu0 %66 }
  0x9e   :  { %v101_v59 = vsub.f32 %v299_v1, %v67_v41  ;;  %v109_v63 = vsub.f32 %v71_v40, %v299_v1 }
  0xa1   :  { %v85_v49 = vpop.permute.xlu1 %84  ;;  %v83_v50 = vpop.permute.xlu0 %82 }
  0xa2   :  { %v99_v53 = vadd.f32 %v85_v49, %v303_v2  ;;  %v98_v54 = vadd.f32 %v83_v50, %v305_v3 }
  0xa4   :  { %v103_v6 = vmul.f32 %v101_v59, %v99_v53  ;;  %v102_v7 = vmul.f32 %v100_v58, %v98_v54 }
  0xa5   :  { %v89_v4 = vpop.permute.xlu1 %88  ;;  %v87_v5 = vpop.permute.xlu0 %86 }
  0xa6   :  { %v107_v8 = vadd.f32 %v89_v4, %v303_v2  ;;  %v106_v9 = vadd.f32 %v87_v5, %v305_v3  ;;  %v105_v14 = vsel %vm58_vm6, %v103_v6, 0.0  ;;  %v104_v15 = vsel %vm58_vm6, %v102_v7, 0.0 }
  0xa8   :  { %v111_v12 = vmul.f32 %v109_v63, %v107_v8  ;;  %v110_v13 = vmul.f32 %v108_v62, %v106_v9 }
  0xaa   :  { %v113_v16 = vsel %vm59_vm7, %v111_v12, 0.0  ;;  %v112_v0 = vsel %vm59_vm7, %v110_v13, 0.0 }
  0xab   :  { %v131_v17 = vsub.f32 %v105_v14, %v113_v16  ;;  %v130_v1 = vsub.f32 %v104_v15, %v112_v0 }
  0xad   :  { %v133_v20 = vmul.f32 50.0, %v131_v17  ;;  %v132_v21 = vmul.f32 50.0, %v130_v1 }
  0xaf   :  { %v138_v2 = vadd.f32 %v136_v18, %v132_v21  ;;  %v139_v3 = vadd.f32 %v137_v19, %v133_v20 }
  0xb1   :  { %v162_v22 = vadd.f32 -1.0, %v138_v2  ;;  %v163_v23 = vadd.f32 -1.0, %v139_v3 }
  0xb3   :  { %142 = vst [vmem:[#allocation7] sm:$0xff] %v162_v22  ;;  %143 = vst [vmem:[#allocation7 + $0x8] sm:$0xff] %v163_v23 }
  0xb4   :  { %226 = shalt.err (!%p223_p6)
}
  0xb5   :  { %s227_s12 = scalar_lea.hbm %s376_s2, 256 }
  0xb6   :  { %p228_p7 = scmp.ne.s32.totalorder %s376_s2, %s227_s12  ;;  %p231_p8 = scmp.lt.u32.totalorder %s227_s12, %s376_s2 }
  0xb8   :  { %p233_p9 = pnand %p231_p8, %p228_p7 }
  0xba   :  { %236 = shalt.err (!%p233_p9)
}
  0xbb   :  { %155 = dma.vmem_to_hbm [thread:$0]  %s150_s8, 256, %s376_s2, [#allocation4], %s244_s19, %s244_s19, %s245_s20  }
  0xbc   :  { %241 = dma.done.wait [#allocation4], 256  }
  0xbd   :  { %242 = vsyncadd [#allocation4], 4294967040 }
  0xbe   :  { %159 = vsyncpa [#allocation3], 1 }
  0xbf   :  { %160 = vsyncpa [#allocation6], 1 }
  0xc0   :  { %161 = vsyncpa [#allocation4], 1 }

</bundles_post_ra>
